<compile_context>
chip_gen: v5e
topology: v5e:2x2
jax: 0.10.0
libtpu: 0.0.40
codegen_flags: <defaults>
</compile_context>

<pallas_src>
import functools

import jax
import jax.numpy as jnp
from jax.experimental import pallas as pl
from jax.experimental.pallas import tpu as pltpu


def _round_up(a: int, m: int) -> int:
    return (a + m - 1) // m * m


def _target_block_bytes() -> int:
    # Bigger double-buffered blocks on v5e/v6e (128 MiB VMEM); ~3 MiB on v7x
    # (64 MiB/TC). Per-step overhead is ~0.35 us, so fewer, larger steps win.
    try:
        vmem_cap = int(getattr(pltpu.get_tpu_info(), "vmem_capacity_bytes", 128 << 20))
    except Exception:
        vmem_cap = 128 << 20
    return (6 << 20) if vmem_cap >= (100 << 20) else (3 << 20)


# --------------------------------------------------------------------------
# Kernels
# --------------------------------------------------------------------------
def _gem_rows_kernel(p_ref, x_ref, o_ref, *, eps: float, hw: int):
    # Rows (channel-instances) on sublanes, full HW on lanes.
    # p_ref: SMEM (1,) f32; x_ref: VMEM (tm, hw); o_ref: VMEM (tm, 1).
    p = p_ref[0]
    x = jnp.maximum(x_ref[...].astype(jnp.float32), eps)     # clamp(min=eps) > 0
    xp = jnp.exp(p * jnp.log(x))                              # x ** p (dynamic exponent)
    mean = jnp.sum(xp, axis=-1, keepdims=True) * (1.0 / hw)   # lane reduce + static scale
    o_ref[...] = jnp.exp(jnp.log(mean) * (1.0 / p)).astype(o_ref.dtype)


def _gem_rows_split_kernel(p_ref, x_ref, o_ref, acc_ref, *, eps: float, hw: int, thw: int):
    # Same layout, but HW is split over an "arbitrary" reduction grid axis.
    # acc_ref: VMEM (tm, 1) f32 partial sum, init/finalize via pl.when.
    j = pl.program_id(1)

    @pl.when(j == 0)
    def _():
        acc_ref[...] = jnp.zeros_like(acc_ref)

    p = p_ref[0]
    x = jnp.maximum(x_ref[...].astype(jnp.float32), eps)
    xp = jnp.exp(p * jnp.log(x))
    if hw % thw != 0:
        # Mask out-of-range lanes of the (partial) last HW tile; they hold
        # undefined data that must not contaminate valid sums.
        col = j * thw + jax.lax.broadcasted_iota(jnp.int32, xp.shape, 1)
        xp = jnp.where(col < hw, xp, 0.0)
    acc_ref[...] += jnp.sum(xp, axis=-1, keepdims=True)

    @pl.when(j == pl.num_programs(1) - 1)
    def _():
        mean = acc_ref[...] * (1.0 / hw)
        o_ref[...] = jnp.exp(jnp.log(mean) * (1.0 / p_ref[0])).astype(o_ref.dtype)


def _gem_lanes_kernel(p_ref, x_ref, o_ref, *, eps: float, hw: int):
    # Small/low-occupancy HW: relayout in-kernel (XLU is idle in this EUP-bound
    # kernel) so the log/exp hot path runs lane-dense and the output store is a
    # lane-dense (1, tc) row.  x_ref: VMEM (tc, hw); o_ref: VMEM (1, tc).
    p = p_ref[0]
    xt = jnp.transpose(x_ref[...].astype(jnp.float32), (1, 0))   # (hw, tc)
    xt = jnp.maximum(xt, eps)
    xp = jnp.exp(p * jnp.log(xt))
    mean = jnp.sum(xp, axis=0, keepdims=True) * (1.0 / hw)       # sublane reduce -> (1, tc)
    o_ref[...] = jnp.exp(jnp.log(mean) * (1.0 / p)).astype(o_ref.dtype)


# --------------------------------------------------------------------------
# pallas_call wrappers
# --------------------------------------------------------------------------
def _gem_rows_call(x2d, p_f32, eps, cost):
    nc, hw = x2d.shape
    itemsize = x2d.dtype.itemsize
    tbb = _target_block_bytes()

    # Split HW over an "arbitrary" reduction axis only when one 8-row block
    # would already exceed the block budget (very large feature maps).
    if 8 * hw * itemsize <= tbb:
        thw, n_hw = hw, 1
    else:
        thw = max(128, (tbb // (8 * itemsize)) // 128 * 128)
        n_hw = pl.cdiv(hw, thw)

    tm = max(8, (tbb // (thw * itemsize)) // 8 * 8)
    tm = min(tm, 4096, _round_up(nc, 8))
    if pl.cdiv(nc, tm) < 2 and nc > 8:          # keep both v7x TensorCores busy
        tm = _round_up(pl.cdiv(nc, 2), 8)

    in_block = tm * thw * itemsize
    out_pad = tm * 128 * itemsize               # (tm, 1) pads to 128 lanes in VMEM
    acc_pad = tm * 128 * 4
    vmem_bytes = int(min(48 << 20,
                         max(8 << 20, 2 * in_block + 2 * out_pad + acc_pad + (4 << 20))))

    if n_hw == 1:
        return pl.pallas_call(
            functools.partial(_gem_rows_kernel, eps=eps, hw=hw),
            out_shape=jax.ShapeDtypeStruct((nc, 1), x2d.dtype),
            grid=(pl.cdiv(nc, tm),),
            in_specs=[
                pl.BlockSpec(memory_space=pltpu.MemorySpace.SMEM),     # p scalar
                pl.BlockSpec((tm, hw), lambda i: (i, 0)),              # x row tile
            ],
            out_specs=pl.BlockSpec((tm, 1), lambda i: (i, 0)),
            compiler_params=pltpu.CompilerParams(
                dimension_semantics=("parallel",),
                vmem_limit_bytes=vmem_bytes),
            cost_estimate=cost,
        )(p_f32, x2d)

    return pl.pallas_call(
        functools.partial(_gem_rows_split_kernel, eps=eps, hw=hw, thw=thw),
        out_shape=jax.ShapeDtypeStruct((nc, 1), x2d.dtype),
        grid=(pl.cdiv(nc, tm), n_hw),
        in_specs=[
            pl.BlockSpec(memory_space=pltpu.MemorySpace.SMEM),
            pl.BlockSpec((tm, thw), lambda i, j: (i, j)),
        ],
        out_specs=pl.BlockSpec((tm, 1), lambda i, j: (i, 0)),
        scratch_shapes=[pltpu.VMEM((tm, 1), jnp.float32)],
        compiler_params=pltpu.CompilerParams(
            dimension_semantics=("parallel", "arbitrary"),
            vmem_limit_bytes=vmem_bytes),
        cost_estimate=cost,
    )(p_f32, x2d)


def _gem_lanes_call(x2d, p_f32, eps, cost):
    nc, hw = x2d.shape
    itemsize = x2d.dtype.itemsize
    tbb = _target_block_bytes()

    tc = max(128, (tbb // (hw * itemsize)) // 128 * 128)
    tc = min(tc, 32768, _round_up(nc, 128))
    if pl.cdiv(nc, tc) < 2 and nc > 128:        # keep both v7x TensorCores busy
        tc = _round_up(pl.cdiv(nc, 2), 128)

    in_block = tc * hw * itemsize
    xt_pad = _round_up(hw, 8) * tc * 4          # transposed f32 working copy
    out_pad = 8 * tc * itemsize
    vmem_bytes = int(min(48 << 20,
                         max(8 << 20, 2 * in_block + 2 * xt_pad + 2 * out_pad + (4 << 20))))

    return pl.pallas_call(
        functools.partial(_gem_lanes_kernel, eps=eps, hw=hw),
        out_shape=jax.ShapeDtypeStruct((1, nc), x2d.dtype),
        grid=(pl.cdiv(nc, tc),),
        in_specs=[
            pl.BlockSpec(memory_space=pltpu.MemorySpace.SMEM),         # p scalar
            pl.BlockSpec((tc, hw), lambda i: (i, 0)),                  # x row tile
        ],
        out_specs=pl.BlockSpec((1, tc), lambda i: (0, i)),             # lane-dense out
        compiler_params=pltpu.CompilerParams(
            dimension_semantics=("parallel",),
            vmem_limit_bytes=vmem_bytes),
        cost_estimate=cost,
    )(p_f32, x2d)


def gem_pallas(x: jax.Array, p: jax.Array, eps: float = 1e-6) -> jax.Array:
    """GeM pooling. x: (N, C, H, W); p: (1,) learnable scalar. Returns (N, C, 1, 1)."""
    n, c, h, w = x.shape
    nc, hw = n * c, h * w
    x2d = x.reshape(nc, hw)                      # contiguous reshape: no extra HBM traffic
    p_f32 = jnp.asarray(p, dtype=jnp.float32).reshape((1,))

    itemsize = x.dtype.itemsize
    cost = pl.CostEstimate(
        flops=3 * nc * hw,
        transcendentals=2 * nc * hw,             # log + exp per element
        bytes_accessed=nc * hw * itemsize + nc * itemsize,
    )

    # Route by lane occupancy of HW (not a hard 128 cutoff): low occupancy and
    # small HW -> lane-dense path with in-kernel relayout.
    lane_occ = hw / (128.0 * ((hw + 127) // 128))
    if lane_occ < 0.7 and hw <= 512:
        try:
            return _gem_lanes_call(x2d, p_f32, eps, cost).reshape(n, c, 1, 1)
        except Exception:
            # Defensive fallback if this Mosaic build cannot lower the in-kernel
            # minor-dim transpose for this (unaligned) HW; the rows path is
            # always valid, just lane-sparse in the elementwise stage.
            pass
    return _gem_rows_call(x2d, p_f32, eps, cost).reshape(n, c, 1, 1)


def gem_reference(x, p, eps=1e-6):
    xp = jnp.power(jnp.maximum(x.astype(jnp.float32), eps), p[0])
    m = jnp.mean(xp, axis=(-2, -1), keepdims=True)
    return jnp.power(m, 1.0 / p[0]).astype(x.dtype)


if __name__ == "__main__":
    key = jax.random.PRNGKey(0)
    k1, k2, k3, k4 = jax.random.split(key, 4)
    eps = 1e-6
    # GeM.__init__: self.p = nn.Parameter(torch.ones(1) * 3) -> deterministic init.
    p = jnp.ones((1,), dtype=jnp.float32) * 3.0

    def check(x, name):
        out = jax.block_until_ready(gem_pallas(x, p, eps))
        ref = gem_reference(x, p, eps)
        assert out.shape == (x.shape[0], x.shape[1], 1, 1), (name, out.shape)
        err = jnp.max(jnp.abs(out.astype(jnp.float32) - ref.astype(jnp.float32)))
        assert jnp.allclose(out, ref, atol=1e-4, rtol=1e-4), f"{name}: max err {err}"

    # 1) hw-on-lanes path (hw = 256, full occupancy).
    check(jax.random.normal(k1, (2, 4, 16, 16), dtype=jnp.float32), "rows")
    # 2) lane-dense path with in-kernel relayout (hw = 49).
    check(jax.random.normal(k2, (2, 8, 7, 7), dtype=jnp.float32), "lanes")
    # 3) non-divisible NC (= 15) and >= 2 parallel grid steps.
    check(jax.random.normal(k3, (3, 5, 16, 16), dtype=jnp.float32), "partial-nc")
    # 4) very large feature map -> split-HW reduction axis with partial last tile.
    check(jax.random.normal(k4, (1, 4, 512, 512), dtype=jnp.float32), "split-hw")

    print("KERNEL_OK")
</pallas_src>

<mosaic_0001>
module attributes {stable_mosaic.version = 11 : i64} {
  func.func @_gem_rows_kernel(%arg0: i32, %arg1: memref<1xf32, #tpu.memory_space<smem>>, %arg2: memref<8x256xf32, #tpu.memory_space<vmem>>, %arg3: memref<8x1xf32, #tpu.memory_space<vmem>>) attributes {dimension_semantics = [#tpu.dimension_semantics<parallel>], iteration_bounds = array<i64: 1>, scalar_prefetch = 0 : i64, scratch_operands = 0 : i64, tpu.core_type = #tpu.core_type<tc>, window_params = [{transform_indices = @transform_0, window_bounds = array<i64: 1>}, {transform_indices = @transform_1, window_bounds = array<i64: 8, 256>}, {transform_indices = @transform_2, window_bounds = array<i64: 8, 1>}]} {
    %c0 = arith.constant 0 : index
    %0 = memref.load %arg1[%c0] : memref<1xf32, #tpu.memory_space<smem>>
    %c0_0 = arith.constant 0 : index
    %c0_1 = arith.constant 0 : index
    %1 = vector.load %arg2[%c0_0, %c0_1] : memref<8x256xf32, #tpu.memory_space<vmem>>, vector<8x256xf32>
    %cst = arith.constant 9.99999997E-7 : f32
    %2 = vector.broadcast %cst : f32 to vector<8x256xf32>
    %3 = arith.maximumf %1, %2 : vector<8x256xf32>
    %4 = math.log %3 : vector<8x256xf32>
    %5 = vector.broadcast %0 : f32 to vector<8x256xf32>
    %6 = arith.mulf %5, %4 : vector<8x256xf32>
    %7 = math.exp %6 : vector<8x256xf32>
    %cst_2 = arith.constant dense<0.000000e+00> : vector<8xf32>
    %8 = vector.multi_reduction <add>, %7, %cst_2 [1] : vector<8x256xf32> to vector<8xf32>
    %9 = vector.shape_cast %8 : vector<8xf32> to vector<8x1xf32>
    %cst_3 = arith.constant 3.906250e-03 : f32
    %10 = vector.broadcast %cst_3 : f32 to vector<8x1xf32>
    %11 = arith.mulf %9, %10 : vector<8x1xf32>
    %12 = math.log %11 : vector<8x1xf32>
    %cst_4 = arith.constant 1.000000e+00 : f32
    %13 = arith.divf %cst_4, %0 : f32
    %14 = vector.broadcast %13 : f32 to vector<8x1xf32>
    %15 = arith.mulf %12, %14 : vector<8x1xf32>
    %16 = math.exp %15 : vector<8x1xf32>
    %c0_5 = arith.constant 0 : index
    %c0_6 = arith.constant 0 : index
    %17 = vector.load %arg3[%c0_5, %c0_6] : memref<8x1xf32, #tpu.memory_space<vmem>>, vector<8x1xf32>
    tpu.vector_store %arg3[%c0_5, %c0_6], %16 {strides = array<i32>} : memref<8x1xf32, #tpu.memory_space<vmem>>, vector<8x1xf32>,
    return
  }
  func.func @transform_0(%arg0: i32) -> i32 {
    %c0_i32 = arith.constant 0 : i32
    %c0_i32_0 = arith.constant 0 : i32
    return %c0_i32 : i32
  }
  func.func @transform_1(%arg0: i32) -> (i32, i32) {
    %c0_i32 = arith.constant 0 : i32
    %c0_i32_0 = arith.constant 0 : i32
    return %arg0, %c0_i32 : i32, i32
  }
  func.func @transform_2(%arg0: i32) -> (i32, i32) {
    %c0_i32 = arith.constant 0 : i32
    %c0_i32_0 = arith.constant 0 : i32
    return %arg0, %c0_i32 : i32, i32
  }
}

</mosaic_0001>

<bundles_post_ra>
// kernel: tpu_custom_call.1
= control target key start
LH: loop header
LB: loop body
LE: loop exit
PB: predicated region body
PF: predicated region fallthrough
CT: control target
= control target key end

     0   :  { %8 = vsyncpa [#allocation4], 0  ;;  %s118_s12 = smov [#allocation3]   ;;  %s143_s0 = inlined_call_operand.<no memory space> [shape: f32[1], index: 0, kind: input, shape index: {}]   ;;  %s144_s1 = inlined_call_operand.hbm [shape: f32[8,256], index: 1, kind: input, shape index: {}]   ;;  %s145_s2 = inlined_call_operand.vmem [shape: f32[8,1], index: 2, kind: output, shape index: {}]  }
   0x1   :  { %s16_s11 = sshll.u32 %s144_s1, 4  ;;  %s18_s13 = sshll.u32 %s118_s12, 4  ;;  %s17_s11 = int_to_ptr.hbm [resolvable:$true] %s16_s11  ;;  %s19_s13 = int_to_ptr.vmem [resolvable:$true] %s18_s13 }
   0x2   :  { %21 = dma.hbm_to_vmem [thread:$0]  %s17_s11, 256, %s19_s13, [#allocation4]  }
   0x3   :  { %116 = dma.done.wait [#allocation4], 256  }
   0x4   :  { %117 = vsyncadd [#allocation4], 4294967040  ;;  %v35_v0 = vstv %s143_s0  ;;  %v27_v2 = vld [vmem:[#allocation3] sm:$0xff]  ;;  %v28_v3 = vld [vmem:[#allocation3 + $0x8] sm:$0xff]  ;;  %vm68_vm4 = vcmask 7168  }
   0x5   :  { %78 = vrcp.f32 %v35_v0  ;;  %v29_v4 = vmax.f32 %v27_v2, 1e-06  ;;  %v30_v5 = vmax.f32 %v28_v3, 1e-06  ;;  %vm54_vm0 = vweird.f32 %v35_v0 }
   0x6   :  { %v60_v7 = vand.u32 2147483648, %v35_v0  ;;  %v58_v9 = vand.u32 2147483647, %v35_v0 }
   0x7   :  { %80 = vlog2.f32 %v29_v4 }
   0x8   :  { %82 = vlog2.f32 %v30_v5  ;;  %v61_v11 = vor.u32 1.1754944e-38, %v60_v7  ;;  %vm59_vm3 = vcmp.eq.f32.partialorder %v58_v9, 8.507059e+37 }
   0xb   :  { %v79_v1 = vpop.eup %78 }
   0xc   :  { %v50_v6 = vmul.f32 %v79_v1, %v35_v0  ;;  %vm55_vm1 = vweird.f32 %v79_v1 }
   0xd   :  { %vm56_vm2 = vmor %vm54_vm0, %vm55_vm1  ;;  %v81_v13 = vpop.eup %80 }
   0xe   :  { %v51_v8 = vsub.f32 1.0, %v50_v6  ;;  %v83_v15 = vpop.eup %82  ;;  %v32_v16 = vmul.f32 0.6931472, %v81_v13 }
   0xf   :  { %v34_v18 = vmul.f32 0.6931472, %v83_v15 }
  0x10   :  { %v52_v10 = vmul.f32 %v79_v1, %v51_v8  ;;  %v36_v19 = vmul.f32 %v35_v0, %v32_v16 }
  0x11   :  { %v37_v20 = vmul.f32 %v35_v0, %v34_v18 }
  0x12   :  { %v53_v12 = vadd.f32 %v79_v1, %v52_v10  ;;  %v38_v21 = vmul.f32 1.442695, %v36_v19 }
  0x13   :  { %v40_v22 = vmul.f32 1.442695, %v37_v20 }
  0x14   :  { %v57_v14 = vsel %vm56_vm2, %v79_v1, %v53_v12  ;;  %84 = vpow2.f32 %v38_v21 }
  0x15   :  { %v62_v17 = vsel %vm59_vm3, %v61_v11, %v57_v14  ;;  %86 = vpow2.f32 %v40_v22 }
  0x16   :  { %75 = vpush %v62_v17 }
  0x1a   :  { %v85_v23 = vpop.eup %84 }
  0x1b   :  { %v87_v24 = vpop.eup %86 }
  0x1c   :  { %v42_v25 = vadd.f32 %v87_v24, %v85_v23 }
  0x1e   :  { %43 = vadd.xlane.f32.xlu0 %v42_v25 }
  0x47   :  { %s76_s0 = spop %75 }
  0x48   :  { %v64_v29 = vstv %s76_s0 }
  0x91   :  { %v44_v26 = vpop.xlane.xlu0 %43 }
  0x92   :  { %v45_v27 = vmul.f32 0.00390625, %v44_v26 }
  0x94   :  { %88 = vlog2.f32 %v45_v27 }
  0x9a   :  { %v89_v28 = vpop.eup %88 }
  0x9b   :  { %v47_v30 = vmul.f32 0.6931472, %v89_v28 }
  0x9d   :  { %v65_v31 = vmul.f32 %v64_v29, %v47_v30 }
  0x9f   :  { %v66_v32 = vmul.f32 1.442695, %v65_v31 }
  0xa1   :  { %90 = vpow2.f32 %v66_v32 }
  0xa7   :  { %v91_v33 = vpop.eup %90 }
  0xa8   :  { %69 = vst.msk [vmem:[%s145_s2] sm:$0xff] %vm68_vm4, %v91_v33 }
  0xa9   :  { %74 = vsyncpa [#allocation4], 1 }

</bundles_post_ra>
